<compile_context>
chip_gen: v5e
topology: v5e:2x2
jax: 0.10.0
libtpu: 0.0.40
codegen_flags: <defaults>
</compile_context>

<pallas_src>
import jax
import jax.numpy as jnp
from jax import lax
from jax.experimental import pallas as pl
from jax.experimental.pallas import tpu as pltpu


def _patch_embed_kernel(x_ref, w_ref, b_ref, o_ref):
    # x_ref: (K, TILE_M) bf16 patches (lane dim = patch index, lane-dense)
    # w_ref: (E, K)      bf16 flattened conv weight
    # b_ref: (E, 1)      f32 bias
    # o_ref: (E, TILE_M) output block (NCHW-compatible (B, E, Hp*Wp) layout)
    acc = lax.dot_general(
        w_ref[...], x_ref[...],
        dimension_numbers=(((1,), (0,)), ((), ())),     # (E,K) x (K,M) -> (E,M)
        preferred_element_type=jnp.float32)             # f32 MXU accumulate
    acc = acc + b_ref[...]                              # (E,1) broadcast over lanes
    o_ref[...] = acc.astype(o_ref.dtype)


def patch_embed_forward(x, weight, bias, patch_size, out_dtype=None,
                        max_tile_m=4096):
    """Replicates PatchEmbed.forward (norm_layer=None).

    x:      (B, C, H, W)   NCHW input
    weight: (E, C, ph, pw) conv weight (stride == kernel size)
    bias:   (E,)           conv bias
    returns (B, E, ceil(H/ph), ceil(W/pw)) NCHW, dtype = out_dtype or x.dtype.
    """
    ph, pw = patch_size
    B, C, H, W = x.shape
    E = weight.shape[0]
    out_dtype = x.dtype if out_dtype is None else out_dtype

    # F.pad semantics: zero-pad right on W, bottom on H.
    pad_w = (pw - W % pw) % pw
    pad_h = (ph - H % ph) % ph

    # Single XLA pass over the input: f32 read -> bf16 (B, K, M) patch write
    # (K-major so the kernel's activation tile is lane-dense along M).
    # TODO(synk): fully fusing this gather into the kernel needs a minormost-dim
    # strided load (x_ref[..., pl.ds(j, Wp, stride=pw)]), which Mosaic does not
    # reliably lower; keeping it as one bf16 XLA pass bounds the extra traffic
    # to ~0.5x of the f32 input read.
    xc = x.astype(jnp.bfloat16)
    if pad_w or pad_h:
        xc = jnp.pad(xc, ((0, 0), (0, 0), (0, pad_h), (0, pad_w)))
    Hp, Wp = (H + pad_h) // ph, (W + pad_w) // pw
    K = C * ph * pw
    M = Hp * Wp
    patches = xc.reshape(B, C, Hp, ph, Wp, pw)
    patches = jnp.transpose(patches, (0, 1, 3, 5, 2, 4))   # (B, C, ph, pw, Hp, Wp)
    patches = patches.reshape(B, K, M)                     # (B, K, M)

    w_mat = weight.reshape(E, K).astype(jnp.bfloat16)      # (E, K), (c,i,j) order
    b_mat = bias.reshape(E, 1).astype(jnp.float32)         # (E, 1)

    # Tile the patch axis: whole-image M if it fits the cap (block == full dim
    # satisfies the (8,128) rule even when M % 128 != 0); otherwise the largest
    # multiple of 128 under the cap, with a masked ragged last block.
    tile_m = M if M <= max_tile_m else (max_tile_m // 128) * 128
    n_m = pl.cdiv(M, tile_m)

    # VMEM budget: double-buffered x/out blocks + weights, with headroom.
    out_itemsize = jnp.dtype(out_dtype).itemsize
    need = (2 * (K * tile_m * 2 + E * tile_m * out_itemsize)
            + E * K * 2 + E * 4 + (1 << 20))
    vmem_limit = int(min(48 << 20, max(24 << 20, 2 * need)))

    out = pl.pallas_call(
        _patch_embed_kernel,
        out_shape=jax.ShapeDtypeStruct((B, E, M), out_dtype),
        grid_spec=pltpu.PrefetchScalarGridSpec(
            num_scalar_prefetch=0,
            grid=(B, n_m),
            in_specs=[
                pl.BlockSpec((None, K, tile_m), lambda b, m: (b, 0, m)),
                pl.BlockSpec((E, K), lambda b, m: (0, 0)),
                pl.BlockSpec((E, 1), lambda b, m: (0, 0)),
            ],
            out_specs=pl.BlockSpec((None, E, tile_m), lambda b, m: (b, 0, m)),
        ),
        compiler_params=pltpu.CompilerParams(
            dimension_semantics=("parallel", "parallel"),
            vmem_limit_bytes=vmem_limit,
        ),
    )(patches, w_mat, b_mat)

    # (B, E, Hp*Wp) -> (B, E, Hp, Wp): contiguous split of the minor dim, no copy.
    out = out.reshape(B, E, Hp, Wp)
    # TODO(synk): norm_layer is None in the default module config -> no norm here.
    return out


def _conv_ref(x, weight, bias, patch_size):
    """f32 reference == nn.Conv2d(stride=kernel) applied after F.pad."""
    ph, pw = patch_size
    B, C, H, W = x.shape
    pad_w = (pw - W % pw) % pw
    pad_h = (ph - H % ph) % ph
    if pad_w or pad_h:
        x = jnp.pad(x, ((0, 0), (0, 0), (0, pad_h), (0, pad_w)))
    out = lax.conv_general_dilated(
        x, weight, window_strides=patch_size, padding="VALID",
        dimension_numbers=("NCHW", "OIHW", "NCHW"))
    return out + bias.reshape(1, -1, 1, 1)


if __name__ == "__main__":
    key = jax.random.PRNGKey(0)
    k_x, k_w, k_b, k_x2 = jax.random.split(key, 4)

    patch_size = (4, 4)
    B, C, embed_dim = 2, 3, 32

    weight = jax.random.normal(
        k_w, (embed_dim, C, patch_size[0], patch_size[1]), dtype=jnp.float32) * 0.02
    bias = jax.random.normal(k_b, (embed_dim,), dtype=jnp.float32) * 0.02

    # Case 1: H, W divisible by the patch size.
    x1 = jax.random.normal(k_x, (B, C, 16, 16), dtype=jnp.float32)
    out1 = jax.block_until_ready(patch_embed_forward(x1, weight, bias, patch_size))
    ref1 = jax.block_until_ready(_conv_ref(x1, weight, bias, patch_size))
    assert out1.shape == (B, embed_dim, 4, 4)
    # bf16 GEMM operands with f32 accumulate -> loose-ish tolerance vs f32 conv.
    assert jnp.allclose(out1, ref1, atol=1e-2, rtol=1e-2)

    # Case 2: exercises the F.pad path (H, W not divisible by the patch size).
    x2 = jax.random.normal(k_x2, (B, C, 18, 18), dtype=jnp.float32)
    out2 = jax.block_until_ready(patch_embed_forward(x2, weight, bias, patch_size))
    ref2 = jax.block_until_ready(_conv_ref(x2, weight, bias, patch_size))
    assert out2.shape == (B, embed_dim, 5, 5)
    assert jnp.allclose(out2, ref2, atol=1e-2, rtol=1e-2)

    print("KERNEL_OK")
</pallas_src>

<mosaic_0001>
module attributes {stable_mosaic.version = 11 : i64} {
  func.func @_patch_embed_kernel(%arg0: i32, %arg1: i32, %arg2: memref<1x48x16xbf16, #tpu.memory_space<vmem>>, %arg3: memref<32x48xbf16, #tpu.memory_space<vmem>>, %arg4: memref<32x1xf32, #tpu.memory_space<vmem>>, %arg5: memref<1x32x16xf32, #tpu.memory_space<vmem>>) attributes {dimension_semantics = [#tpu.dimension_semantics<parallel>, #tpu.dimension_semantics<parallel>], iteration_bounds = array<i64: 2, 1>, scalar_prefetch = 0 : i64, scratch_operands = 0 : i64, tpu.core_type = #tpu.core_type<tc>, window_params = [{transform_indices = @transform_0, window_bounds = array<i64: 1, 48, 16>}, {pipeline_mode = #tpu.pipeline_mode<synchronous>, transform_indices = @transform_1, window_bounds = array<i64: 32, 48>}, {pipeline_mode = #tpu.pipeline_mode<synchronous>, transform_indices = @transform_2, window_bounds = array<i64: 32, 1>}, {transform_indices = @transform_3, window_bounds = array<i64: 1, 32, 16>}]} {
    %c0 = arith.constant 0 : index
    %c0_0 = arith.constant 0 : index
    %0 = vector.load %arg3[%c0, %c0_0] : memref<32x48xbf16, #tpu.memory_space<vmem>>, vector<32x48xbf16>
    %c0_1 = arith.constant 0 : index
    %c0_2 = arith.constant 0 : index
    %c0_3 = arith.constant 0 : index
    %1 = vector.load %arg2[%c0_1, %c0_2, %c0_3] : memref<1x48x16xbf16, #tpu.memory_space<vmem>>, vector<1x48x16xbf16>
    %2 = vector.shape_cast %1 : vector<1x48x16xbf16> to vector<48x16xbf16>
    %cst = arith.constant dense<0.000000e+00> : vector<32x16xf32>
    %3 = tpu.matmul %0, %2, %cst {dimension_numbers = #tpu.dot_dimension_numbers<[1], [0], [0], [1], [0, 0, 1, 1], [], []>} : vector<32x48xbf16>, vector<48x16xbf16>, vector<32x16xf32> -> vector<32x16xf32>
    %c0_4 = arith.constant 0 : index
    %c0_5 = arith.constant 0 : index
    %4 = vector.load %arg4[%c0_4, %c0_5] : memref<32x1xf32, #tpu.memory_space<vmem>>, vector<32x1xf32>
    %5 = vector.broadcast %4 : vector<32x1xf32> to vector<32x16xf32>
    %6 = arith.addf %3, %5 : vector<32x16xf32>
    %c0_6 = arith.constant 0 : index
    %c0_7 = arith.constant 0 : index
    %c0_8 = arith.constant 0 : index
    %7 = vector.load %arg5[%c0_6, %c0_7, %c0_8] : memref<1x32x16xf32, #tpu.memory_space<vmem>>, vector<1x32x16xf32>
    %8 = vector.shape_cast %7 : vector<1x32x16xf32> to vector<32x16xf32>
    %9 = vector.shape_cast %6 : vector<32x16xf32> to vector<1x32x16xf32>
    tpu.vector_store %arg5[%c0_6, %c0_7, %c0_8], %9 {strides = array<i32>} : memref<1x32x16xf32, #tpu.memory_space<vmem>>, vector<1x32x16xf32>,
    return
  }
  func.func @transform_0(%arg0: i32, %arg1: i32) -> (i32, i32, i32) {
    %c0_i32 = arith.constant 0 : i32
    %c0_i32_0 = arith.constant 0 : i32
    return %arg0, %c0_i32, %arg1 : i32, i32, i32
  }
  func.func @transform_1(%arg0: i32, %arg1: i32) -> (i32, i32) {
    %c0_i32 = arith.constant 0 : i32
    %c0_i32_0 = arith.constant 0 : i32
    %c0_i32_1 = arith.constant 0 : i32
    return %c0_i32, %c0_i32_0 : i32, i32
  }
  func.func @transform_2(%arg0: i32, %arg1: i32) -> (i32, i32) {
    %c0_i32 = arith.constant 0 : i32
    %c0_i32_0 = arith.constant 0 : i32
    %c0_i32_1 = arith.constant 0 : i32
    return %c0_i32, %c0_i32_0 : i32, i32
  }
  func.func @transform_3(%arg0: i32, %arg1: i32) -> (i32, i32, i32) {
    %c0_i32 = arith.constant 0 : i32
    %c0_i32_0 = arith.constant 0 : i32
    return %arg0, %c0_i32, %arg1 : i32, i32, i32
  }
}

</mosaic_0001>

<bundles_post_ra>
// kernel: tpu_custom_call.1
= control target key start
LH: loop header
LB: loop body
LE: loop exit
PB: predicated region body
PF: predicated region fallthrough
CT: control target
= control target key end

     0   :  { %s493_s12 = smov 0   ;;  %s495_s13 = smov 0   ;;  %s544_s0 = inlined_call_operand.vmem [shape: bf16[2,48,16], index: 0, kind: input, shape index: {}]   ;;  %s545_s1 = inlined_call_operand.vmem [shape: bf16[32,48], index: 1, kind: input, shape index: {}]   ;;  %s546_s2 = inlined_call_operand.vmem [shape: f32[32,1], index: 2, kind: input, shape index: {}]   ;;  %s547_s3 = inlined_call_operand.vmem [shape: f32[2,32,16], index: 3, kind: output, shape index: {}]  }
   0x1   :  { %s497_s14 = smov 0  }
   0x2 LB: > { %s25_s15 = sadd.s32 1, %s466_s13  ;;  %p383_p0 = scmp.ge.s32.totalorder %s470_s14, 1  ;;  %s470_s14 = sphi %s497_s14, %s13_s14   ;;  %s466_s13 = sphi %s495_s13, %s549_s13   ;;  %s462_s12 = sphi %s493_s12, %s548_s12  }
   0x3   : > { %p27_p1 = scmp.ge.s32.totalorder %s25_s15, 2  ;;  %p156_p2 = scmp.lt.s32.totalorder %s470_s14, 3 }
   0x5   : > { %s551_s15 = smov (%p27_p1, %s25_s15), 0  ;;  %p157_p3 = pnand %p383_p0, %p156_p2 }
   0x6   : > { %p186_p4 = scmp.lt.s32.totalorder (!%p157_p3), %s462_s12, 1 }
   0x7   : > { %160 = sbr.rel (%p157_p3) target bundleno = 166 (0xa6), region = 32 }
   0xc   : > { %v215_v0 = vld [vmem:[%s546_s2 + $0x10] sm:$0xff]  ;;  %v472_v1 = vmov 0   ;;  %v213_v2 = vld [vmem:[%s546_s2] sm:$0xff]  ;;  %s553_s12 = smov (!%p186_p4, %s462_s12), 1  ;;  %v216_v4 = vld [vmem:[%s546_s2 + $0x18] sm:$0xff]  ;;  %vm265_vm0 = vcmask 392192  }
   0xd   : > { %447 = vset.pattern.permute.xlu1 %v472_v1  ;;  %446 = vset.pattern.permute.xlu0 %v472_v1  ;;  %s420_s20 = smul.u32 24, %s553_s12  ;;  %v214_v5 = vld [vmem:[%s546_s2 + $0x8] sm:$0xff]  ;;  %v412_v8 = vld [vmem:[%s545_s1] sm:$0xff]  ;;  %s411_s5 = sshll.u32 %s553_s12, 5  ;;  %vm291_vm1 = vcmask 130048  }
   0xe   : > { %229 = vperm.xlu1 %447, %v215_v0   ;;  %219 = vperm.xlu0 %446, %v213_v2   ;;  %v413_v9 = vld [vmem:[%s545_s1 + $0x8] sm:$0xff]  ;;  %s201_s8 = scalar_lea.vmem %s547_s3, %s411_s5 }
   0xf   : > { %s193_s23 = scalar_lea.vmem %s544_s0, %s420_s20 }
  0x10   : > { %v416_v3 = vld [vmem:[%s193_s23 + $0x10] sm:$0xff]  ;;  %v415_v6 = vld [vmem:[%s193_s23 + $0x8] sm:$0xff]  ;;  %v414_v7 = vld [vmem:[%s193_s23] sm:$0xff] }
  0x11   : > { %277 = vmatpush.bf16.msra.mxu0 %v416_v3  ;;  %417 = vmatpush.bf16.msra.mxu1 %v416_v3 }
  0x15   : > { %278 = vmatpush.bf16.msra.mxu0 %v415_v6  ;;  %418 = vmatpush.bf16.msra.mxu1 %v415_v6 }
  0x16   : > { %234 = vperm.xlu1 %447, %v216_v4   ;;  %224 = vperm.xlu0 %446, %v214_v5  }
  0x19   : > { %279 = vmatpush.bf16.msra.mxu0 %v414_v7  ;;  %419 = vmatpush.bf16.msra.mxu1 %v414_v7 }
  0x1c   : > { %407 = vmatmul.msk.bf16.vlgmr.msra.gmra.mxu0 %vm265_vm0, %v412_v8  ;;  %408 = vmatmul.msk.bf16.vlgmr.msra.gmra.mxu1 %vm265_vm0, %v413_v9 }
  0x80   : > { %v230_v10 = vpop.permute.xlu1 %229  ;;  %v220_v11 = vpop.permute.xlu0 %219 }
  0x88   : > { %v235_v16 = vpop.permute.xlu1 %234  ;;  %v225_v17 = vpop.permute.xlu0 %224 }
  0x99   : > { %v281_v12 = vpop.f32.mrf.mxu0  ;;  %v286_v13 = vpop.f32.mrf.mxu1 }
  0x9a   : > { %v282_v14 = vadd.f32 %v281_v12, %v220_v11  ;;  %v287_v15 = vadd.f32 %v286_v13, %v230_v10 }
  0x9c   : > { %292 = vst.msk [vmem:[%s201_s8] sm:$0xff] %vm291_vm1, %v282_v14 }
  0x9d   : > { %294 = vst.msk [vmem:[%s201_s8 + $0x10] sm:$0xff] %vm291_vm1, %v287_v15 }
  0xa1   : > { %v283_v18 = vpop.f32.mrf.mxu0  ;;  %v288_v19 = vpop.f32.mrf.mxu1 }
  0xa2   : > { %v284_v20 = vadd.f32 %v283_v18, %v225_v17  ;;  %v289_v21 = vadd.f32 %v288_v19, %v235_v16 }
  0xa4   : > { %293 = vst.msk [vmem:[%s201_s8 + $0x8] sm:$0xff] %vm291_vm1, %v284_v20 }
  0xa5   : > { %295 = vst.msk [vmem:[%s201_s8 + $0x18] sm:$0xff] %vm291_vm1, %v289_v21 }
  0xa6 PF: > { %s13_s14 = sadd.s32 1, %s470_s14   ;;  %s548_s12 = smov %s466_s13 }
  0xa7   : > { %p10_p5 = scmp.ge.s32.totalorder %s13_s14, 4   ;;  %s549_s13 = smov %s551_s15 }
  0xa9   :  { %12 = sbr.rel (!%p10_p5) target bundleno = 2 (0x2), region = 62 }

</bundles_post_ra>
